<compile_context>
chip_gen: v6e
topology: v6e:2x2x1
jax: 0.10.0
libtpu: 0.0.40
codegen_flags: <defaults>
</compile_context>

<pallas_src>
import math
import functools

import jax
import jax.numpy as jnp
from jax.experimental import pallas as pl
from jax.experimental.pallas import tpu as pltpu


def _round_up(x, m):
    return ((x + m - 1) // m) * m


def _vmem_capacity_bytes():
    """Physical VMEM per core (v5e/v6e: 128 MiB, v7x: 64 MiB), with fallbacks."""
    try:
        cap = int(pltpu.get_tpu_info().vmem_capacity_bytes)
        if cap > 0:
            return cap
    except Exception:
        pass
    try:
        kind = jax.devices()[0].device_kind.lower()
        if "v7" in kind:
            return 64 * 1024 * 1024
    except Exception:
        pass
    return 128 * 1024 * 1024


def _pick_batch_tile(B, Sp, Dt, Di, Hp, vmem_limit_bytes):
    """Largest batch tile (multiple of 8) whose working set fits the VMEM budget."""
    bytes_per_row = (
        2 * Sp * Dt * 2                       # x_txt tile, bf16, double-buffered
        + 2 * Di * 2                          # x_img tile, bf16, double-buffered
        + 2 * Hp * 4                          # fused output tile, f32, double-buffered
        + Sp * (4 * Hp * 4 + 2 * Hp * 2)      # txt/kv/pfull f32 + bf16 MXU copies
        + 8 * Hp * 4                          # img/q/q_heads/ctx per-row tensors
    )
    weight_bytes = 2 * (Dt * Hp + Di * Hp + 4 * Hp * Hp) + 4 * 7 * Hp
    budget = vmem_limit_bytes - weight_bytes - (6 << 20)   # headroom for compiler scratch
    tb = max(8, min(512, (budget // max(bytes_per_row, 1)) // 8 * 8))
    tb = min(tb, _round_up(max(B, 1), 8))
    # Prefer >=2 (and even) grid steps so the "parallel" batch axis load-balances
    # across v7x's two TensorCores (near-neutral on v5e/v6e).
    n = -(-B // tb)
    if n > 1 and n % 2 == 1:
        n += 1
        tb = max(8, _round_up(-(-B // n), 8))
    return tb


def _text_image_ca_kernel(nH, hd, seq_len,
                          xt_ref, xi_ref,
                          wt_ref, bt_ref, wi_ref, bi_ref,
                          wq_ref, bq_ref, wkv_ref, bkv_ref,
                          wo_ref, bo_ref,
                          fused_ref):
    """One batch tile: dim-reduce + ReLU, multi-head cross-attention (q-len 1), out-proj."""
    TB, Sp, Dt = xt_ref.shape
    Hp = wq_ref.shape[1]
    cdt = wq_ref.dtype                               # bf16 MXU compute dtype
    scale = 1.0 / math.sqrt(hd)

    # Head-selector mask (nH, Hp) generated in-kernel (no input DMA, no resident buffer).
    col = jax.lax.broadcasted_iota(jnp.int32, (nH, Hp), 1)
    row = jax.lax.broadcasted_iota(jnp.int32, (nH, Hp), 0)
    maskf = jnp.logical_and(col >= row * hd, col < (row + 1) * hd).astype(jnp.float32)

    # --- reduce_dim_txt / reduce_dim_img + ReLU (dropout = identity in eval) ---
    xt = xt_ref[...].reshape(TB * Sp, Dt)            # bf16; Sp % 8 == 0 -> layout-free merge
    txt = jnp.maximum(
        jnp.dot(xt, wt_ref[...], preferred_element_type=jnp.float32) + bt_ref[...], 0.0)
    img = jnp.maximum(
        jnp.dot(xi_ref[...], wi_ref[...], preferred_element_type=jnp.float32) + bi_ref[...], 0.0)

    # --- full-width Q and fused K|V projections (one MXU matmul each) ---
    q = jnp.dot(img.astype(cdt), wq_ref[...], preferred_element_type=jnp.float32) + bq_ref[...]
    kv = jnp.dot(txt.astype(cdt), wkv_ref[...], preferred_element_type=jnp.float32) + bkv_ref[...]
    k = kv[:, :Hp].reshape(TB, Sp, Hp)               # Hp % 128 == 0 -> lane-tile-aligned split
    v = kv[:, Hp:].reshape(TB, Sp, Hp)

    # --- multi-head cross-attention (query length == 1), bf16 MXU operands, f32 softmax ---
    # Scores via one single-batch-dim bf16 contraction (contracts over Hp; with q-len 1
    # this is a negligible fraction of the projection MXU work).
    q_heads = (q[:, None, :] * maskf[None, :, :]).astype(cdt)       # (TB, nH, Hp) bf16
    s = jnp.einsum("bhj,bsj->bhs", q_heads, k.astype(cdt),
                   preferred_element_type=jnp.float32) * scale       # (TB, nH, Sp) f32
    if seq_len < Sp:                                  # static: mask padded key positions
        pos = jax.lax.broadcasted_iota(jnp.int32, (1, 1, Sp), 2)
        s = jnp.where(pos < seq_len, s, -1e30)
    s = s - jnp.max(s, axis=-1, keepdims=True)
    p = jnp.exp(s)
    p = p * pl.reciprocal(jnp.sum(p, axis=-1, keepdims=True), approx=True)

    # Context without the (TB, nH, Hp) f32 blow-up: broadcast the per-head probabilities
    # back to lane width with a tiny K=nH matmul, then VPU multiply + reduce over Sp.
    p_t = jnp.swapaxes(p, 1, 2).reshape(TB * Sp, nH)                  # (TB*Sp, nH)
    pfull = jnp.dot(p_t.astype(cdt), maskf.astype(cdt),
                    preferred_element_type=jnp.float32)               # (TB*Sp, Hp)
    ctx = jnp.sum(pfull.reshape(TB, Sp, Hp) * v, axis=1)              # (TB, Hp) f32

    # --- single full-width output projection (== x_vt.squeeze()); lane-dense store ---
    fused_ref[...] = jnp.dot(ctx.astype(cdt), wo_ref[...],
                             preferred_element_type=jnp.float32) + bo_ref[...]


def text_image_ca_forward(x_txt, x_img, p, *, hidden_size, num_heads, batch_tile=None):
    B, S, Dt = x_txt.shape
    Di = x_img.shape[-1]
    H, nH = hidden_size, num_heads
    hd = H // nH
    assert nH * hd == H
    cdt = jnp.bfloat16

    Hp = _round_up(H, 128)        # lane-dense hidden width
    Sp = _round_up(S, 8)          # sublane-aligned sequence

    # ---- pad weights to Hp on the hidden dims (zero padding keeps the math exact) ----
    def pad_cols(w, c):
        return jnp.pad(w, ((0, 0), (0, c - w.shape[1])))

    def pad_rc(w, r, c):
        return jnp.pad(w, ((0, r - w.shape[0]), (0, c - w.shape[1])))

    wt = pad_cols(p["wt"], Hp).astype(cdt)                   # (Dt, Hp)
    wi = pad_cols(p["wi"], Hp).astype(cdt)                   # (Di, Hp)
    wq = pad_rc(p["wq"], Hp, Hp).astype(cdt)                 # (Hp, Hp)
    wo = pad_rc(p["wo"], Hp, Hp).astype(cdt)                 # (Hp, Hp)
    wkv = jnp.concatenate([pad_rc(p["wk"], Hp, Hp),
                           pad_rc(p["wv"], Hp, Hp)], axis=1).astype(cdt)   # (Hp, 2Hp)
    bt = pad_cols(p["bt"], Hp)
    bi = pad_cols(p["bi"], Hp)
    bq = pad_cols(p["bq"], Hp)
    bo = pad_cols(p["bo"], Hp)
    bkv = jnp.concatenate([pad_cols(p["bk"], Hp), pad_cols(p["bv"], Hp)], axis=1)  # (1, 2Hp)

    # ---- per-generation VMEM limit + batch tile ----
    vmem_cap = _vmem_capacity_bytes()                        # 64 MiB (v7x) / 128 MiB (v5e/v6e)
    vmem_limit = min(int(vmem_cap * 3 // 4), 100 * 1024 * 1024)
    if batch_tile is None:
        batch_tile = _pick_batch_tile(B, Sp, Dt, Di, Hp, vmem_limit)
    TB = max(8, _round_up(batch_tile, 8))
    TB = min(TB, _round_up(B, 8))
    Bp = _round_up(B, TB)

    # ---- pad + cast streamed activations (bf16 halves HBM traffic of the big tensor) ----
    x_txt_p = jnp.pad(x_txt, ((0, Bp - B), (0, Sp - S), (0, 0))).astype(cdt)
    x_img_p = jnp.pad(x_img, ((0, Bp - B), (0, 0))).astype(cdt)

    def resident(arr):            # whole array, same block every grid step, single-buffered
        nd = arr.ndim
        idx = lambda i, nd=nd: (0,) * nd
        try:
            return pl.BlockSpec(arr.shape, idx, pipeline_mode=pl.Buffered(1))
        except TypeError:         # older BlockSpec without pipeline_mode
            return pl.BlockSpec(arr.shape, idx)

    weights = (wt, bt, wi, bi, wq, bq, wkv, bkv, wo, bo)

    fused = pl.pallas_call(
        functools.partial(_text_image_ca_kernel, nH, hd, S),
        out_shape=jax.ShapeDtypeStruct((Bp, Hp), jnp.float32),
        grid=(Bp // TB,),
        in_specs=[pl.BlockSpec((TB, Sp, Dt), lambda i: (i, 0, 0)),
                  pl.BlockSpec((TB, Di), lambda i: (i, 0))]
                 + [resident(w) for w in weights],
        out_specs=pl.BlockSpec((TB, Hp), lambda i: (i, 0)),
        compiler_params=pltpu.CompilerParams(
            dimension_semantics=("parallel",),               # batch tiles shard across TCs
            vmem_limit_bytes=vmem_limit),
    )(x_txt_p, x_img_p, *weights)

    # Classifier: (B,H)@(H,1) is lane-sparse; kept in XLA so the kernel store stays dense.
    return fused[:B, :H] @ p["wc"] + p["bc"]


def reference_forward(x_txt, x_img, p, *, hidden_size, num_heads):
    """Pure-JAX f32 reference mirroring nn.MultiheadAttention math (eval mode)."""
    B, S, _ = x_txt.shape
    H, nH = hidden_size, num_heads
    hd = H // nH
    txt = jax.nn.relu(x_txt @ p["wt"] + p["bt"])          # (B, S, H)
    img = jax.nn.relu(x_img @ p["wi"] + p["bi"])          # (B, H)
    q = img @ p["wq"] + p["bq"]                           # (B, H)
    k = txt @ p["wk"] + p["bk"]                           # (B, S, H)
    v = txt @ p["wv"] + p["bv"]
    qh = q.reshape(B, nH, hd)
    kh = k.reshape(B, S, nH, hd)
    vh = v.reshape(B, S, nH, hd)
    s = jnp.einsum("bhd,bshd->bhs", qh, kh) / jnp.sqrt(hd)
    a = jax.nn.softmax(s, axis=-1)
    ctx = jnp.einsum("bhs,bshd->bhd", a, vh).reshape(B, H)
    fused = ctx @ p["wo"] + p["bo"]
    return fused @ p["wc"] + p["bc"]


if __name__ == "__main__":
    # small shapes consistent with the module
    B, S = 2, 8
    TXT_EMBED, IMG_EMBED = 64, 48
    HIDDEN, NUM_HEADS = 32, 4

    key = jax.random.PRNGKey(0)
    ks = jax.random.split(key, 18)

    def init(k, shape, scale=0.1):
        return (scale * jax.random.normal(k, shape)).astype(jnp.float32)

    params = {
        "wt": init(ks[0], (TXT_EMBED, HIDDEN)), "bt": init(ks[1], (1, HIDDEN)),
        "wi": init(ks[2], (IMG_EMBED, HIDDEN)), "bi": init(ks[3], (1, HIDDEN)),
        "wq": init(ks[4], (HIDDEN, HIDDEN)),    "bq": init(ks[5], (1, HIDDEN)),
        "wk": init(ks[6], (HIDDEN, HIDDEN)),    "bk": init(ks[7], (1, HIDDEN)),
        "wv": init(ks[8], (HIDDEN, HIDDEN)),    "bv": init(ks[9], (1, HIDDEN)),
        "wo": init(ks[10], (HIDDEN, HIDDEN)),   "bo": init(ks[11], (1, HIDDEN)),
        "wc": init(ks[12], (HIDDEN, 1)),        "bc": init(ks[13], (1, 1)),
    }

    x_txt = init(ks[14], (B, S, TXT_EMBED), scale=1.0)
    x_img = init(ks[15], (B, IMG_EMBED), scale=1.0)

    y = text_image_ca_forward(x_txt, x_img, params,
                              hidden_size=HIDDEN, num_heads=NUM_HEADS)
    y = jax.block_until_ready(y)

    y_ref = reference_forward(x_txt, x_img, params,
                              hidden_size=HIDDEN, num_heads=NUM_HEADS)
    assert y.shape == (B, 1)
    # bf16 MXU inputs with f32 accumulation -> relaxed tolerance vs f32 reference
    assert jnp.allclose(y, y_ref, atol=3e-2, rtol=3e-2), (y, y_ref)

    print("KERNEL_OK")
</pallas_src>

<mosaic_0001>
module attributes {stable_mosaic.version = 11 : i64} {
  func.func @_text_image_ca_kernel(%arg0: i32, %arg1: memref<8x8x64xbf16, #tpu.memory_space<vmem>>, %arg2: memref<8x48xbf16, #tpu.memory_space<vmem>>, %arg3: memref<64x128xbf16, #tpu.memory_space<vmem>>, %arg4: memref<1x128xf32, #tpu.memory_space<vmem>>, %arg5: memref<48x128xbf16, #tpu.memory_space<vmem>>, %arg6: memref<1x128xf32, #tpu.memory_space<vmem>>, %arg7: memref<128x128xbf16, #tpu.memory_space<vmem>>, %arg8: memref<1x128xf32, #tpu.memory_space<vmem>>, %arg9: memref<128x256xbf16, #tpu.memory_space<vmem>>, %arg10: memref<1x256xf32, #tpu.memory_space<vmem>>, %arg11: memref<128x128xbf16, #tpu.memory_space<vmem>>, %arg12: memref<1x128xf32, #tpu.memory_space<vmem>>, %arg13: memref<8x128xf32, #tpu.memory_space<vmem>>) attributes {dimension_semantics = [#tpu.dimension_semantics<parallel>], iteration_bounds = array<i64: 1>, scalar_prefetch = 0 : i64, scratch_operands = 0 : i64, tpu.core_type = #tpu.core_type<tc>, window_params = [{transform_indices = @transform_0, window_bounds = array<i64: 8, 8, 64>}, {transform_indices = @transform_1, window_bounds = array<i64: 8, 48>}, {pipeline_mode = #tpu.pipeline_mode<synchronous>, transform_indices = @transform_2, window_bounds = array<i64: 64, 128>}, {pipeline_mode = #tpu.pipeline_mode<synchronous>, transform_indices = @transform_3, window_bounds = array<i64: 1, 128>}, {pipeline_mode = #tpu.pipeline_mode<synchronous>, transform_indices = @transform_4, window_bounds = array<i64: 48, 128>}, {pipeline_mode = #tpu.pipeline_mode<synchronous>, transform_indices = @transform_5, window_bounds = array<i64: 1, 128>}, {pipeline_mode = #tpu.pipeline_mode<synchronous>, transform_indices = @transform_6, window_bounds = array<i64: 128, 128>}, {pipeline_mode = #tpu.pipeline_mode<synchronous>, transform_indices = @transform_7, window_bounds = array<i64: 1, 128>}, {pipeline_mode = #tpu.pipeline_mode<synchronous>, transform_indices = @transform_8, window_bounds = array<i64: 128, 256>}, {pipeline_mode = #tpu.pipeline_mode<synchronous>, transform_indices = @transform_9, window_bounds = array<i64: 1, 256>}, {pipeline_mode = #tpu.pipeline_mode<synchronous>, transform_indices = @transform_10, window_bounds = array<i64: 128, 128>}, {pipeline_mode = #tpu.pipeline_mode<synchronous>, transform_indices = @transform_11, window_bounds = array<i64: 1, 128>}, {transform_indices = @transform_12, window_bounds = array<i64: 8, 128>}]} {
    %0 = tpu.iota {dimensions = array<i32: 1>} : vector<4x128xi32>
    %1 = tpu.iota {dimensions = array<i32: 0>} : vector<4x128xi32>
    %c8_i32 = arith.constant 8 : i32
    %2 = vector.broadcast %c8_i32 : i32 to vector<4x128xi32>
    %3 = arith.muli %1, %2 : vector<4x128xi32>
    %4 = arith.cmpi sge, %0, %3 : vector<4x128xi32>
    %c1_i32 = arith.constant 1 : i32
    %5 = vector.broadcast %c1_i32 : i32 to vector<4x128xi32>
    %6 = arith.addi %1, %5 : vector<4x128xi32>
    %c8_i32_0 = arith.constant 8 : i32
    %7 = vector.broadcast %c8_i32_0 : i32 to vector<4x128xi32>
    %8 = arith.muli %6, %7 : vector<4x128xi32>
    %9 = arith.cmpi slt, %0, %8 : vector<4x128xi32>
    %10 = arith.andi %4, %9 : vector<4x128xi1>
    %11 = arith.extui %10 : vector<4x128xi1> to vector<4x128xi32>
    %12 = arith.sitofp %11 : vector<4x128xi32> to vector<4x128xf32>
    %c0 = arith.constant 0 : index
    %c0_1 = arith.constant 0 : index
    %c0_2 = arith.constant 0 : index
    %13 = vector.load %arg1[%c0, %c0_1, %c0_2] : memref<8x8x64xbf16, #tpu.memory_space<vmem>>, vector<8x8x64xbf16>
    %14 = vector.shape_cast %13 : vector<8x8x64xbf16> to vector<64x64xbf16>
    %c0_3 = arith.constant 0 : index
    %c0_4 = arith.constant 0 : index
    %15 = vector.load %arg3[%c0_3, %c0_4] : memref<64x128xbf16, #tpu.memory_space<vmem>>, vector<64x128xbf16>
    %cst = arith.constant dense<0.000000e+00> : vector<64x128xf32>
    %16 = tpu.matmul %14, %15, %cst {dimension_numbers = #tpu.dot_dimension_numbers<[1], [0], [0], [1], [0, 0, 1, 1], [], []>} : vector<64x64xbf16>, vector<64x128xbf16>, vector<64x128xf32> -> vector<64x128xf32>
    %c0_5 = arith.constant 0 : index
    %c0_6 = arith.constant 0 : index
    %17 = vector.load %arg4[%c0_5, %c0_6] : memref<1x128xf32, #tpu.memory_space<vmem>>, vector<1x128xf32>
    %18 = vector.broadcast %17 : vector<1x128xf32> to vector<64x128xf32>
    %19 = arith.addf %16, %18 : vector<64x128xf32>
    %cst_7 = arith.constant 0.000000e+00 : f32
    %20 = vector.broadcast %cst_7 : f32 to vector<64x128xf32>
    %21 = arith.maximumf %19, %20 : vector<64x128xf32>
    %c0_8 = arith.constant 0 : index
    %c0_9 = arith.constant 0 : index
    %22 = vector.load %arg2[%c0_8, %c0_9] : memref<8x48xbf16, #tpu.memory_space<vmem>>, vector<8x48xbf16>
    %c0_10 = arith.constant 0 : index
    %c0_11 = arith.constant 0 : index
    %23 = vector.load %arg5[%c0_10, %c0_11] : memref<48x128xbf16, #tpu.memory_space<vmem>>, vector<48x128xbf16>
    %cst_12 = arith.constant dense<0.000000e+00> : vector<8x128xf32>
    %24 = tpu.matmul %22, %23, %cst_12 {dimension_numbers = #tpu.dot_dimension_numbers<[1], [0], [0], [1], [0, 0, 1, 1], [], []>} : vector<8x48xbf16>, vector<48x128xbf16>, vector<8x128xf32> -> vector<8x128xf32>
    %c0_13 = arith.constant 0 : index
    %c0_14 = arith.constant 0 : index
    %25 = vector.load %arg6[%c0_13, %c0_14] : memref<1x128xf32, #tpu.memory_space<vmem>>, vector<1x128xf32>
    %26 = vector.broadcast %25 : vector<1x128xf32> to vector<8x128xf32>
    %27 = arith.addf %24, %26 : vector<8x128xf32>
    %cst_15 = arith.constant 0.000000e+00 : f32
    %28 = vector.broadcast %cst_15 : f32 to vector<8x128xf32>
    %29 = arith.maximumf %27, %28 : vector<8x128xf32>
    %30 = arith.truncf %29 : vector<8x128xf32> to vector<8x128xbf16>
    %c0_16 = arith.constant 0 : index
    %c0_17 = arith.constant 0 : index
    %31 = vector.load %arg7[%c0_16, %c0_17] : memref<128x128xbf16, #tpu.memory_space<vmem>>, vector<128x128xbf16>
    %cst_18 = arith.constant dense<0.000000e+00> : vector<8x128xf32>
    %32 = tpu.matmul %30, %31, %cst_18 {dimension_numbers = #tpu.dot_dimension_numbers<[1], [0], [0], [1], [0, 0, 1, 1], [], []>} : vector<8x128xbf16>, vector<128x128xbf16>, vector<8x128xf32> -> vector<8x128xf32>
    %c0_19 = arith.constant 0 : index
    %c0_20 = arith.constant 0 : index
    %33 = vector.load %arg8[%c0_19, %c0_20] : memref<1x128xf32, #tpu.memory_space<vmem>>, vector<1x128xf32>
    %34 = vector.broadcast %33 : vector<1x128xf32> to vector<8x128xf32>
    %35 = arith.addf %32, %34 : vector<8x128xf32>
    %36 = arith.truncf %21 : vector<64x128xf32> to vector<64x128xbf16>
    %c0_21 = arith.constant 0 : index
    %c0_22 = arith.constant 0 : index
    %37 = vector.load %arg9[%c0_21, %c0_22] : memref<128x256xbf16, #tpu.memory_space<vmem>>, vector<128x256xbf16>
    %cst_23 = arith.constant dense<0.000000e+00> : vector<64x256xf32>
    %38 = tpu.matmul %36, %37, %cst_23 {dimension_numbers = #tpu.dot_dimension_numbers<[1], [0], [0], [1], [0, 0, 1, 1], [], []>} : vector<64x128xbf16>, vector<128x256xbf16>, vector<64x256xf32> -> vector<64x256xf32>
    %c0_24 = arith.constant 0 : index
    %c0_25 = arith.constant 0 : index
    %39 = vector.load %arg10[%c0_24, %c0_25] : memref<1x256xf32, #tpu.memory_space<vmem>>, vector<1x256xf32>
    %40 = vector.broadcast %39 : vector<1x256xf32> to vector<64x256xf32>
    %41 = arith.addf %38, %40 : vector<64x256xf32>
    %42 = vector.extract_strided_slice %41 {offsets = [0, 0], sizes = [64, 128], strides = [1, 1]} : vector<64x256xf32> to vector<64x128xf32>
    %43 = vector.shape_cast %42 : vector<64x128xf32> to vector<8x8x128xf32>
    %44 = vector.extract_strided_slice %41 {offsets = [0, 128], sizes = [64, 128], strides = [1, 1]} : vector<64x256xf32> to vector<64x128xf32>
    %45 = vector.shape_cast %44 : vector<64x128xf32> to vector<8x8x128xf32>
    %46 = vector.shape_cast %35 : vector<8x128xf32> to vector<8x1x128xf32>
    %47 = vector.shape_cast %12 : vector<4x128xf32> to vector<1x4x128xf32>
    %48 = vector.broadcast %46 : vector<8x1x128xf32> to vector<8x4x128xf32>
    %49 = vector.broadcast %47 : vector<1x4x128xf32> to vector<8x4x128xf32>
    %50 = arith.mulf %48, %49 : vector<8x4x128xf32>
    %51 = arith.truncf %50 : vector<8x4x128xf32> to vector<8x4x128xbf16>
    %52 = arith.truncf %43 : vector<8x8x128xf32> to vector<8x8x128xbf16>
    "tpu.trace_start"() <{level = 10 : i32, message = "bhj,bsj->bhs"}> : () -> ()
    %cst_26 = arith.constant dense<0.000000e+00> : vector<8x4x8xf32>
    %53 = tpu.matmul %51, %52, %cst_26 {dimension_numbers = #tpu.dot_dimension_numbers<[2], [2], [1], [1], [0, 0, 0, 1, 1, 1], [0], [0]>} : vector<8x4x128xbf16>, vector<8x8x128xbf16>, vector<8x4x8xf32> -> vector<8x4x8xf32>
    "tpu.trace_stop"() : () -> ()
    %cst_27 = arith.constant 0.353553385 : f32
    %54 = vector.broadcast %cst_27 : f32 to vector<8x4x8xf32>
    %55 = arith.mulf %53, %54 : vector<8x4x8xf32>
    %cst_28 = arith.constant dense<0xFF800000> : vector<8x4xf32>
    %56 = vector.multi_reduction <maximumf>, %55, %cst_28 [2] : vector<8x4x8xf32> to vector<8x4xf32>
    %57 = vector.shape_cast %56 : vector<8x4xf32> to vector<8x4x1xf32>
    %58 = vector.broadcast %57 : vector<8x4x1xf32> to vector<8x4x8xf32>
    %59 = arith.subf %55, %58 : vector<8x4x8xf32>
    %60 = math.exp %59 : vector<8x4x8xf32>
    %cst_29 = arith.constant dense<0.000000e+00> : vector<8x4xf32>
    %61 = vector.multi_reduction <add>, %60, %cst_29 [2] : vector<8x4x8xf32> to vector<8x4xf32>
    %62 = vector.shape_cast %61 : vector<8x4xf32> to vector<8x4x1xf32>
    %63 = tpu.reciprocal %62 {approx = true} : vector<8x4x1xf32> -> vector<8x4x1xf32>
    %64 = vector.broadcast %63 : vector<8x4x1xf32> to vector<8x4x8xf32>
    %65 = arith.mulf %60, %64 : vector<8x4x8xf32>
    %66 = tpu.transpose %65, [0, 2, 1] : vector<8x4x8xf32> -> vector<8x8x4xf32>
    %67 = vector.shape_cast %66 : vector<8x8x4xf32> to vector<64x4xf32>
    %68 = arith.truncf %67 : vector<64x4xf32> to vector<64x4xbf16>
    %69 = arith.truncf %12 : vector<4x128xf32> to vector<4x128xbf16>
    %cst_30 = arith.constant dense<0.000000e+00> : vector<64x128xf32>
    %70 = tpu.matmul %68, %69, %cst_30 {dimension_numbers = #tpu.dot_dimension_numbers<[1], [0], [0], [1], [0, 0, 1, 1], [], []>} : vector<64x4xbf16>, vector<4x128xbf16>, vector<64x128xf32> -> vector<64x128xf32>
    %71 = vector.shape_cast %70 : vector<64x128xf32> to vector<8x8x128xf32>
    %72 = arith.mulf %71, %45 : vector<8x8x128xf32>
    %cst_31 = arith.constant dense<0.000000e+00> : vector<8x128xf32>
    %73 = vector.multi_reduction <add>, %72, %cst_31 [1] : vector<8x8x128xf32> to vector<8x128xf32>
    %74 = arith.truncf %73 : vector<8x128xf32> to vector<8x128xbf16>
    %c0_32 = arith.constant 0 : index
    %c0_33 = arith.constant 0 : index
    %75 = vector.load %arg11[%c0_32, %c0_33] : memref<128x128xbf16, #tpu.memory_space<vmem>>, vector<128x128xbf16>
    %cst_34 = arith.constant dense<0.000000e+00> : vector<8x128xf32>
    %76 = tpu.matmul %74, %75, %cst_34 {dimension_numbers = #tpu.dot_dimension_numbers<[1], [0], [0], [1], [0, 0, 1, 1], [], []>} : vector<8x128xbf16>, vector<128x128xbf16>, vector<8x128xf32> -> vector<8x128xf32>
    %c0_35 = arith.constant 0 : index
    %c0_36 = arith.constant 0 : index
    %77 = vector.load %arg12[%c0_35, %c0_36] : memref<1x128xf32, #tpu.memory_space<vmem>>, vector<1x128xf32>
    %78 = vector.broadcast %77 : vector<1x128xf32> to vector<8x128xf32>
    %79 = arith.addf %76, %78 : vector<8x128xf32>
    %c0_37 = arith.constant 0 : index
    %c0_38 = arith.constant 0 : index
    %80 = vector.load %arg13[%c0_37, %c0_38] : memref<8x128xf32, #tpu.memory_space<vmem>>, vector<8x128xf32>
    tpu.vector_store %arg13[%c0_37, %c0_38], %79 {strides = array<i32>} : memref<8x128xf32, #tpu.memory_space<vmem>>, vector<8x128xf32>,
    return
  }
  func.func @transform_0(%arg0: i32) -> (i32, i32, i32) {
    %c0_i32 = arith.constant 0 : i32
    %c0_i32_0 = arith.constant 0 : i32
    %c0_i32_1 = arith.constant 0 : i32
    return %arg0, %c0_i32, %c0_i32_0 : i32, i32, i32
  }
  func.func @transform_1(%arg0: i32) -> (i32, i32) {
    %c0_i32 = arith.constant 0 : i32
    %c0_i32_0 = arith.constant 0 : i32
    return %arg0, %c0_i32 : i32, i32
  }
  func.func @transform_2(%arg0: i32) -> (i32, i32) {
    %c0_i32 = arith.constant 0 : i32
    %c0_i32_0 = arith.constant 0 : i32
    %c0_i32_1 = arith.constant 0 : i32
    return %c0_i32, %c0_i32_0 : i32, i32
  }
  func.func @transform_3(%arg0: i32) -> (i32, i32) {
    %c0_i32 = arith.constant 0 : i32
    %c0_i32_0 = arith.constant 0 : i32
    %c0_i32_1 = arith.constant 0 : i32
    return %c0_i32, %c0_i32_0 : i32, i32
  }
  func.func @transform_4(%arg0: i32) -> (i32, i32) {
    %c0_i32 = arith.constant 0 : i32
    %c0_i32_0 = arith.constant 0 : i32
    %c0_i32_1 = arith.constant 0 : i32
    return %c0_i32, %c0_i32_0 : i32, i32
  }
  func.func @transform_5(%arg0: i32) -> (i32, i32) {
    %c0_i32 = arith.constant 0 : i32
    %c0_i32_0 = arith.constant 0 : i32
    %c0_i32_1 = arith.constant 0 : i32
    return %c0_i32, %c0_i32_0 : i32, i32
  }
  func.func @transform_6(%arg0: i32) -> (i32, i32) {
    %c0_i32 = arith.constant 0 : i32
    %c0_i32_0 = arith.constant 0 : i32
    %c0_i32_1 = arith.constant 0 : i32
    return %c0_i32, %c0_i32_0 : i32, i32
  }
  func.func @transform_7(%arg0: i32) -> (i32, i32) {
    %c0_i32 = arith.constant 0 : i32
    %c0_i32_0 = arith.constant 0 : i32
    %c0_i32_1 = arith.constant 0 : i32
    return %c0_i32, %c0_i32_0 : i32, i32
  }
  func.func @transform_8(%arg0: i32) -> (i32, i32) {
    %c0_i32 = arith.constant 0 : i32
    %c0_i32_0 = arith.constant 0 : i32
    %c0_i32_1 = arith.constant 0 : i32
    return %c0_i32, %c0_i32_0 : i32, i32
  }
  func.func @transform_9(%arg0: i32) -> (i32, i32) {
    %c0_i32 = arith.constant 0 : i32
    %c0_i32_0 = arith.constant 0 : i32
    %c0_i32_1 = arith.constant 0 : i32
    return %c0_i32, %c0_i32_0 : i32, i32
  }
  func.func @transform_10(%arg0: i32) -> (i32, i32) {
    %c0_i32 = arith.constant 0 : i32
    %c0_i32_0 = arith.constant 0 : i32
    %c0_i32_1 = arith.constant 0 : i32
    return %c0_i32, %c0_i32_0 : i32, i32
  }
  func.func @transform_11(%arg0: i32) -> (i32, i32) {
    %c0_i32 = arith.constant 0 : i32
    %c0_i32_0 = arith.constant 0 : i32
    %c0_i32_1 = arith.constant 0 : i32
    return %c0_i32, %c0_i32_0 : i32, i32
  }
  func.func @transform_12(%arg0: i32) -> (i32, i32) {
    %c0_i32 = arith.constant 0 : i32
    %c0_i32_0 = arith.constant 0 : i32
    return %arg0, %c0_i32 : i32, i32
  }
}

</mosaic_0001>

<bundles_post_ra>
// kernel: tpu_custom_call.1
= control target key start
LH: loop header
LB: loop body
LE: loop exit
PB: predicated region body
PF: predicated region fallthrough
CT: control target
= control target key end

     0   :  { %17 = vsyncpa [#allocation3], 0  ;;  %s2589_s0 = inlined_call_operand.hbm [shape: bf16[8,8,64], index: 0, kind: input, shape index: {}]   ;;  %s2590_s1 = inlined_call_operand.hbm [shape: bf16[8,48], index: 1, kind: input, shape index: {}]   ;;  %s2591_s2 = inlined_call_operand.hbm [shape: bf16[64,128], index: 2, kind: input, shape index: {}]   ;;  %s2592_s3 = inlined_call_operand.vmem [shape: f32[1,128], index: 3, kind: input, shape index: {}]   ;;  %s2593_s4 = inlined_call_operand.hbm [shape: bf16[48,128], index: 4, kind: input, shape index: {}]   ;;  %s2594_s5 = inlined_call_operand.vmem [shape: f32[1,128], index: 5, kind: input, shape index: {}]   ;;  %s2595_s6 = inlined_call_operand.hbm [shape: bf16[128,128], index: 6, kind: input, shape index: {}]   ;;  %s2596_s7 = inlined_call_operand.vmem [shape: f32[1,128], index: 7, kind: input, shape index: {}]   ;;  %s2597_s8 = inlined_call_operand.hbm [shape: bf16[128,256], index: 8, kind: input, shape index: {}]   ;;  %s2598_s9 = inlined_call_operand.vmem [shape: f32[1,256], index: 9, kind: input, shape index: {}]   ;;  %s2599_s10 = inlined_call_operand.hbm [shape: bf16[128,128], index: 10, kind: input, shape index: {}]   ;;  %s2600_s11 = inlined_call_operand.vmem [shape: f32[1,128], index: 11, kind: input, shape index: {}]   ;;  %s2601_s12 = inlined_call_operand.hbm [shape: f32[8,128], index: 12, kind: output, shape index: {}]  }
   0x1   :  { %18 = vsyncpa [#allocation6], 0 }
   0x2   :  { %19 = vsyncpa [#allocation9], 0 }
   0x3   :  { %20 = vsyncpa [#allocation12], 0 }
   0x4   :  { %21 = vsyncpa [#allocation4], 0  ;;  %s2305_s21 = smov [#allocation5]  }
   0x5   :  { %s40_s22 = sshll.u32 %s2305_s21, 4  ;;  %s41_s22 = int_to_ptr.vmem [resolvable:$true] %s40_s22 }
   0x6   :  { %s2143_s23 = scalar_lea.vmem %s41_s22, 64  ;;  %p2148_p1 = scmp.lt.s32.totalorder %s41_s22, %s41_s22 }
   0x7   :  { %p2144_p0 = scmp.ne.s32.totalorder %s41_s22, %s2143_s23  ;;  %p2149_p2 = scmp.lt.s32.totalorder %s2143_s23, %s2143_s23 }
   0x9   :  { %p2150_p3 = por %p2149_p2, %p2148_p1 }
   0xb   :  { %p2151_p4 = pnand %p2150_p3, %p2144_p0 }
   0xd   :  { %2154 = shalt.err (!%p2151_p4)
}
   0xe   :  { %43 = dma.hbm_to_vmem [thread:$0]  %s2590_s1, 64, %s41_s22, [#allocation6]  }
   0xf   :  { %s2306_s26 = smov [#allocation8]   ;;  %s2307_s28 = smov [#allocation11]  }
  0x10   :  { %s63_s27 = sshll.u32 %s2306_s26, 4  ;;  %s91_s29 = sshll.u32 %s2307_s28, 4  ;;  %s64_s27 = int_to_ptr.vmem [resolvable:$true] %s63_s27  ;;  %s92_s29 = int_to_ptr.vmem [resolvable:$true] %s91_s29 }
  0x11   :  { %s2163_s30 = scalar_lea.vmem %s64_s27, 384  ;;  %p2168_p6 = scmp.lt.s32.totalorder %s64_s27, %s64_s27 }
  0x12   :  { %p2164_p5 = scmp.ne.s32.totalorder %s64_s27, %s2163_s30  ;;  %p2169_p7 = scmp.lt.s32.totalorder %s2163_s30, %s2163_s30 }
  0x14   :  { %p2170_p8 = por %p2169_p7, %p2168_p6 }
  0x16   :  { %p2171_p9 = pnand %p2170_p8, %p2164_p5 }
  0x18   :  { %2174 = shalt.err (!%p2171_p9)
}
  0x19   :  { %s2308_s13 = smov 64   ;;  %s2309_s14 = smov 4  }
  0x1a   :  { %69 = dma.hbm_to_vmem [thread:$0]  %s2593_s4, 384, %s64_s27, [#allocation9], %s2308_s13, %s2308_s13, %s2309_s14  }
  0x1b   :  { %s2183_s1 = scalar_lea.vmem %s92_s29, 2048  ;;  %p2188_p11 = scmp.lt.s32.totalorder %s92_s29, %s92_s29 }
  0x1c   :  { %p2184_p10 = scmp.ne.s32.totalorder %s92_s29, %s2183_s1  ;;  %p2189_p12 = scmp.lt.s32.totalorder %s2183_s1, %s2183_s1 }
  0x1e   :  { %p2190_p13 = por %p2189_p12, %p2188_p11 }
  0x20   :  { %p2191_p0 = pnand %p2190_p13, %p2184_p10 }
  0x22   :  { %2194 = shalt.err (!%p2191_p0)
}
  0x23   :  { %s2310_s17 = smov 128   ;;  %s2311_s18 = smov 8  }
  0x24   :  { %97 = dma.hbm_to_vmem [thread:$0]  %s2597_s8, 2048, %s92_s29, [#allocation12], %s2310_s17, %s2310_s17, %s2311_s18  }
  0x25   :  { %s2312_s21 = smov [#allocation2]   ;;  %s2313_s23 = smov [#allocation7]  }
  0x26   :  { %s27_s22 = sshll.u32 %s2312_s21, 4  ;;  %s49_s24 = sshll.u32 %s2313_s23, 4  ;;  %s28_s22 = int_to_ptr.vmem [resolvable:$true] %s27_s22  ;;  %s50_s24 = int_to_ptr.vmem [resolvable:$true] %s49_s24 }
  0x27   :  { %s2203_s4 = scalar_lea.vmem %s28_s22, 512  ;;  %p2208_p2 = scmp.lt.s32.totalorder %s28_s22, %s28_s22 }
  0x28   :  { %p2204_p1 = scmp.ne.s32.totalorder %s28_s22, %s2203_s4  ;;  %p2209_p3 = scmp.lt.s32.totalorder %s2203_s4, %s2203_s4 }
  0x2a   :  { %p2210_p4 = por %p2209_p3, %p2208_p2 }
  0x2c   :  { %p2211_p5 = pnand %p2210_p4, %p2204_p1 }
  0x2e   :  { %2214 = shalt.err (!%p2211_p5)
}
  0x2f   :  { %33 = dma.hbm_to_vmem [thread:$0]  %s2589_s0, 512, %s28_s22, [#allocation3], %s2308_s13, %s2308_s13, %s2309_s14  }
  0x30   :  { %s2223_s8 = scalar_lea.vmem %s50_s24, 512  ;;  %p2228_p7 = scmp.lt.s32.totalorder %s50_s24, %s50_s24 }
  0x31   :  { %p2224_p6 = scmp.ne.s32.totalorder %s50_s24, %s2223_s8  ;;  %p2229_p8 = scmp.lt.s32.totalorder %s2223_s8, %s2223_s8 }
  0x33   :  { %p2230_p9 = por %p2229_p8, %p2228_p7 }
  0x35   :  { %p2231_p10 = pnand %p2230_p9, %p2224_p6 }
  0x37   :  { %2234 = shalt.err (!%p2231_p10)
}
  0x38   :  { %55 = dma.hbm_to_vmem [thread:$0]  %s2591_s2, 512, %s50_s24, [#allocation6], %s2308_s13, %s2308_s13, %s2309_s14  }
  0x39   :  { %s2314_s29 = smov [#allocation10]   ;;  %s2315_s15 = smov [#allocation13]  }
  0x3a   :  { %s77_s30 = sshll.u32 %s2314_s29, 4  ;;  %s105_s0 = sshll.u32 %s2315_s15, 4  ;;  %s78_s30 = int_to_ptr.vmem [resolvable:$true] %s77_s30  ;;  %s106_s0 = int_to_ptr.vmem [resolvable:$true] %s105_s0 }
  0x3b   :  { %s2243_s16 = scalar_lea.vmem %s78_s30, 1024  ;;  %p2248_p12 = scmp.lt.s32.totalorder %s78_s30, %s78_s30 }
  0x3c   :  { %p2244_p11 = scmp.ne.s32.totalorder %s78_s30, %s2243_s16  ;;  %p2249_p13 = scmp.lt.s32.totalorder %s2243_s16, %s2243_s16 }
  0x3e   :  { %p2250_p0 = por %p2249_p13, %p2248_p12 }
  0x40   :  { %p2251_p1 = pnand %p2250_p0, %p2244_p11 }
  0x42   :  { %2254 = shalt.err (!%p2251_p1)
}
  0x43   :  { %83 = dma.hbm_to_vmem [thread:$0]  %s2595_s6, 1024, %s78_s30, [#allocation9], %s2308_s13, %s2308_s13, %s2309_s14  }
  0x44   :  { %s2263_s2 = scalar_lea.vmem %s106_s0, 1024  ;;  %p2268_p3 = scmp.lt.s32.totalorder %s106_s0, %s106_s0 }
  0x45   :  { %p2264_p2 = scmp.ne.s32.totalorder %s106_s0, %s2263_s2  ;;  %p2269_p4 = scmp.lt.s32.totalorder %s2263_s2, %s2263_s2 }
  0x47   :  { %p2270_p5 = por %p2269_p4, %p2268_p3 }
  0x49   :  { %p2271_p6 = pnand %p2270_p5, %p2264_p2 }
  0x4b   :  { %2274 = shalt.err (!%p2271_p6)
}
  0x4c   :  { %111 = dma.hbm_to_vmem [thread:$0]  %s2599_s10, 1024, %s106_s0, [#allocation12], %s2308_s13, %s2308_s13, %s2309_s14  }
  0x4d   :  { %2295 = dma.done.wait [#allocation3], 512  }
  0x4e   :  { %2296 = vsyncadd [#allocation3], 4294966784 }
  0x4f   :  { %2297 = dma.done.wait [#allocation6], 576  }
  0x50   :  { %2298 = vsyncadd [#allocation6], 4294966720 }
  0x51   :  { %2299 = dma.done.wait [#allocation9], 1408  }
  0x52   :  { %2300 = vsyncadd [#allocation9], 4294965888 }
  0x53   :  { %2301 = dma.done.wait [#allocation12], 3072  }
  0x54   :  { %2302 = vsyncadd [#allocation12], 4294964224  ;;  %v2316_v0 = vmov 0.0   ;;  %vm2317_vm0 = vmmov 0   ;;  %v2052_v1 = vld [vmem:[#allocation7 + $0x18] sm:$0xff]   ;;  %v2053_v2 = vld [vmem:[#allocation7 + $0x10] sm:$0xff]  }
  0x55   :  { %1899 = vmatprep.subr.bf16.mxu1 %v2316_v0  ;;  %1905 = vmatprep.mubr.msk.bf16.mxu1 %vm2317_vm0, %v2316_v0  ;;  %v2055_v3 = vld [vmem:[#allocation8 + $0x10] sm:$0xff]   ;;  %v2054_v4 = vld [vmem:[#allocation7 + $0x8] sm:$0xff]   ;;  %vm215_vm1 = vcmask 523264   ;;  %v2058_v6 = vld [vmem:[#allocation2] sm:$0xff]   ;;  %vm333_vm2 = vcmask 392192   ;;  %v2318_v37 = vmov 0  }
  0x56   :  { %1883 = vmatprep.subr.bf16.mxu0 %v2052_v1  ;;  %1900 = vmatpush3.bf16.msra.mxu1 %v2055_v3  ;;  %v2057_v5 = vld [vmem:[#allocation8 + $0x8] sm:$0xff]   ;;  %v2056_v7 = vld [vmem:[#allocation7] sm:$0xff]   ;;  %v301_v9 = vld [vmem:[#allocation5] sm:$0xf]  ;;  %vm1117_vm6 = vcmask 60416   ;;  %vm1480_vm7 = vcmask 1041408  }
  0x57   :  { %1884 = vmatpush3.bf16.msra.mxu0 %v2052_v1  ;;  %1901 = vmatprep.subr.bf16.mxu1 %v2316_v0  ;;  %v2060_v8 = vld [vmem:[#allocation8] sm:$0xff]   ;;  %v2063_v10 = vld [vmem:[#allocation10 + $0x38] sm:$0xff]   ;;  %v2067_v16 = vld [vmem:[#allocation10 + $0x30] sm:$0xff]   ;;  %vm1467_vm8 = vcmask 31744   ;;  %vm1652_vm9 = vcmask 1041409   ;;  %vm1654_vm10 = vcmask 1042434  }
  0x58   :  { %1885 = vmatprep.subr.bf16.mxu0 %v2053_v2  ;;  %1891 = vmatprep.mubr.msk.bf16.mxu0 %vm215_vm1, %v2058_v6  ;;  %v2066_v11 = vld [vmem:[#allocation11 + $0x74] ss:$8 sps:$4 sm:$0xff]   ;;  %v2059_v12 = vld [vmem:[#allocation2 + $0x8] sm:$0xff]   ;;  %v2068_v17 = vld [vmem:[#allocation11 + $0x60] ss:$8 sps:$4 sm:$0xff]   ;;  %vm1656_vm11 = vcmask 1043459  }
  0x59   :  { %v2061_v13 = vld [vmem:[#allocation2 + $0x10] sm:$0xff]   ;;  %v2070_v15 = vld [vmem:[#allocation11 + $0x64] ss:$8 sps:$4 sm:$0xff]   ;;  %v2062_v18 = vld [vmem:[#allocation2 + $0x18] sm:$0xff]   ;;  %vm1658_vm12 = vcmask 1044484   ;;  %vm1660_vm13 = vcmask 1045509  }
  0x5a   :  { %1902 = vmatpush3.bf16.msra.mxu1 %v2057_v5  ;;  %v2064_v14 = vld [vmem:[#allocation11 + $0x70] ss:$8 sps:$4 sm:$0xff]   ;;  %v2074_v19 = vld [vmem:[#allocation11 + $0x54] ss:$8 sps:$4 sm:$0xff]   ;;  %v2071_v20 = vld [vmem:[#allocation10 + $0x28] sm:$0xff]   ;;  %vm1662_vm14 = vcmask 1046534  }
  0x5b   :  { %1886 = vmatpush3.bf16.msra.mxu0 %v2053_v2  ;;  %1903 = vmatprep.subr.bf16.mxu1 %v2316_v0  ;;  %v2072_v21 = vld [vmem:[#allocation11 + $0x50] ss:$8 sps:$4 sm:$0xff]   ;;  %v2078_v22 = vld [vmem:[#allocation11 + $0x44] ss:$8 sps:$4 sm:$0xff]   ;;  %v2076_v24 = vld [vmem:[#allocation11 + $0x40] ss:$8 sps:$4 sm:$0xff]  }
  0x5c   :  { %1887 = vmatprep.subr.bf16.mxu0 %v2054_v4  ;;  %v2075_v23 = vld [vmem:[#allocation10 + $0x20] sm:$0xff]   ;;  %v2082_v25 = vld [vmem:[#allocation11 + $0x34] ss:$8 sps:$4 sm:$0xff]   ;;  %v2080_v27 = vld [vmem:[#allocation11 + $0x30] ss:$8 sps:$4 sm:$0xff]   ;;  %vm1664_vm15 = vcmask 1047559  }
  0x5d   :  { %v2079_v26 = vld [vmem:[#allocation10 + $0x18] sm:$0xff]   ;;  %v2083_v28 = vld [vmem:[#allocation10 + $0x10] sm:$0xff]   ;;  %v2086_v29 = vld [vmem:[#allocation11 + $0x24] ss:$8 sps:$4 sm:$0xff]   ;;  %s2320_s22 = smov [#allocation14]  }
  0x5e   :  { %1904 = vmatpush3.bf16.msra.mxu1 %v2060_v8  ;;  %v2087_v30 = vld [vmem:[#allocation10 + $0x8] sm:$0xff]   ;;  %v2090_v32 = vld [vmem:[#allocation11 + $0x14] ss:$8 sps:$4 sm:$0xff]   ;;  %v2091_v33 = vld [vmem:[#allocation10] sm:$0xff]   ;;  %s1763_s23 = sshll.u32 %s2320_s22, 4  ;;  %s1764_s23 = int_to_ptr.vmem [resolvable:$true] %s1763_s23 }
  0x5f   :  { %1888 = vmatpush3.bf16.msra.mxu0 %v2054_v4  ;;  %1909 = vmatprep.subr.bf16.mxu1 %v2316_v0  ;;  %v2084_v31 = vld [vmem:[#allocation11 + $0x20] ss:$8 sps:$4 sm:$0xff]   ;;  %v2088_v34 = vld [vmem:[#allocation11 + $0x10] ss:$8 sps:$4 sm:$0xff]   ;;  %v2094_v35 = vld [vmem:[#allocation11 + $0x4] ss:$8 sps:$4 sm:$0xff]   ;;  %p2280_p8 = scmp.lt.s32.totalorder %s1764_s23, %s1764_s23 }
  0x60   :  { %1889 = vmatprep.subr.bf16.mxu0 %v2056_v7  ;;  %v2092_v36 = vld [vmem:[#allocation11] ss:$8 sps:$4 sm:$0xff]   ;;  %v1789_v38 = vld [vmem:[%s2594_s5] ss:$0 sm:$0xff]  ;;  %s2275_s24 = scalar_lea.vmem %s1764_s23, 128 }
  0x61   :  { %1906 = vmatmul.mubr.msk.bf16.vlgmr.msra.gmra.mxu1 %vm333_vm2, %v301_v9  ;;  %v1776_v47 = vld [vmem:[%s2592_s3] ss:$0 sm:$0xff]  ;;  %p2276_p7 = scmp.ne.s32.totalorder %s1764_s23, %s2275_s24  ;;  %p2281_p9 = scmp.lt.s32.totalorder %s2275_s24, %s2275_s24 }
  0x62   :  { %1910 = vmatpush3.bf16.msra.mxu1 %v2063_v10  ;;  %1925 = vmatprep.mubr.msk.bf16.mxu1 %vm2317_vm0, %v2316_v0 }
  0x63   :  { %1890 = vmatpush3.bf16.msra.mxu0 %v2056_v7  ;;  %1911 = vmatprep.subr.bf16.mxu1 %v2316_v0  ;;  %p2282_p10 = por %p2281_p9, %p2280_p8 }
  0x64   :  { %602 = vmatprep.subr.bf16.mxu0 %v2066_v11 }
  0x65   :  { %p2283_p11 = pnand %p2282_p10, %p2276_p7 }
  0x66   :  { %1892 = vmatmul.mubr.msk.bf16.vlgmr.msra.gmra.mxu0 %vm215_vm1, %v2059_v12  ;;  %1912 = vmatpush3.bf16.msra.mxu1 %v2067_v16  ;;  %v136_v12 = vlaneseq }
  0x67   :  { %1895 = vmatprep.mubr.msk.bf16.mxu0 %vm215_vm1, %v2061_v13  ;;  %603 = vmatpush1.bf16.msra.mxu0 %v2064_v14  ;;  %v2319_v13 = vmov 1966171168  }
  0x68   :  { %604 = vmatprep.subr.bf16.mxu0 %v2070_v15  ;;  %1913 = vmatprep.subr.bf16.mxu1 %v2316_v0  ;;  %v678_v14 = vunpack.c.l.s4 %v2319_v13  ;;  %v139_v15 = vshrl.u32 %v136_v12, 7 }
  0x6a   :  { %1914 = vmatpush3.bf16.msra.mxu1 %v2071_v20  ;;  %v679_v16 = vunpack.c.0.s8 %v678_v14  ;;  %v137_v20 = vand.u32 127, %v136_v12 }
  0x6b   :  { %605 = vmatpush1.bf16.msra.mxu0 %v2068_v17  ;;  %1915 = vmatprep.subr.bf16.mxu1 %v2316_v0  ;;  %v142_v17 = vadd.s32 1, %v139_v15 }
  0x6c   :  { %606 = vmatprep.subr.bf16.mxu0 %v2074_v19  ;;  %v2456_v19 = vsub.s32 %v679_v16, %v139_v15 }
  0x6e   :  { %1896 = vmatmul.mubr.msk.bf16.gmra.mxu0 %vm215_vm1, %v2062_v18  ;;  %1916 = vmatpush3.bf16.msra.mxu1 %v2075_v23  ;;  %v1794_v18 = vld [vmem:[%s2596_s7] ss:$0 sm:$0xff] }
  0x6f   :  { %607 = vmatpush1.bf16.msra.mxu0 %v2072_v21  ;;  %1917 = vmatprep.subr.bf16.mxu1 %v2316_v0  ;;  %v140_v21 = vmul.u32 8, %v139_v15 }
  0x70   :  { %608 = vmatprep.subr.bf16.mxu0 %v2078_v22  ;;  %634 = vmatprep.mubr.bf16.mxu0 %v2318_v37  ;;  %v143_v22 = vmul.u32 8, %v142_v17 }
  0x71   :  { %vm141_vm3 = vcmp.ge.s32.totalorder %v137_v20, %v140_v21 }
  0x72   :  { %1918 = vmatpush3.bf16.msra.mxu1 %v2079_v26  ;;  %vm144_vm4 = vcmp.lt.s32.totalorder %v137_v20, %v143_v22 }
  0x73   :  { %609 = vmatpush1.bf16.msra.mxu0 %v2076_v24  ;;  %1919 = vmatprep.subr.bf16.mxu1 %v2316_v0  ;;  %vm145_vm5 = vmand %vm141_vm3, %vm144_vm4 }
  0x74   :  { %610 = vmatprep.subr.bf16.mxu0 %v2082_v25  ;;  %v2458_v25 = vsub.s32 0, %v139_v15 }
  0x76   :  { %1920 = vmatpush3.bf16.msra.mxu1 %v2083_v28  ;;  %v510_v28 = vld [vmem:[%s2598_s9] sm:$0x3] }
  0x77   :  { %611 = vmatpush1.bf16.msra.mxu0 %v2080_v27  ;;  %1921 = vmatprep.subr.bf16.mxu1 %v2316_v0 }
  0x78   :  { %612 = vmatprep.subr.bf16.mxu0 %v2086_v29  ;;  %v518_v29 = vsub.s32 1, %v139_v15 }
  0x7a   :  { %1922 = vmatpush3.bf16.msra.mxu1 %v2087_v30 }
  0x7b   :  { %613 = vmatpush1.bf16.msra.mxu0 %v2084_v31  ;;  %1923 = vmatprep.subr.bf16.mxu1 %v2316_v0 }
  0x7c   :  { %614 = vmatprep.subr.bf16.mxu0 %v2090_v32 }
  0x7e   :  { %1924 = vmatpush3.bf16.msra.mxu1 %v2091_v33  ;;  %v2466_v33 = vrot.slane %v510_v28, %v2458_v25 }
  0x7f   :  { %615 = vmatpush1.bf16.msra.mxu0 %v2088_v34  ;;  %1935 = vmatprep.subr.bf16.mxu1 %v2316_v0 }
  0x80   :  { %616 = vmatprep.subr.bf16.mxu0 %v2094_v35  ;;  %v2468_v35 = vrot.slane %v510_v28, %v518_v29 }
  0x83   :  { %617 = vmatpush1.bf16.msra.mxu0 %v2092_v36 }
  0x84   :  { %1929 = vmatprep.subr.bf16.mxu0 %v2316_v0 }
 0x121   :  { %v371_v39 = vpop.f32.mrf.mxu1 }
 0x122   :  { %v372_v40 = vadd.f32 %v1789_v38, %v371_v39  ;;  %v2473_v39 = vsel %vm145_vm5, 1.0, %v2316_v0 }
 0x123   :  { %v1907_v42 = vpop.f32.mrf.mxu1 }
 0x124   :  { %v377_v43 = vmax.f32 %v372_v40, 0.0 }
 0x125   :  { %v374_v45 = vpop.f32.mrf.mxu1 }
 0x126   :  { %v1893_v41 = vpop.f32.mrf.mxu0  ;;  %v378_v46 = vpack.c.bf16 %v377_v43, %v377_v43 }
 0x127   :  { %v1908_v49 = vpop.f32.mrf.mxu1  ;;  %v271_v60 = vadd.f32 %v1893_v41, %v1776_v47 }
 0x128   :  { %v262_v44 = vpop.f32.mrf.mxu0  ;;  %1926 = vmatmul.mubr.bf16.vlgmr.msra.gmra.mxu1 %v378_v46 }
 0x129   :  { %v263_v50 = vadd.f32 %v1776_v47, %v262_v44  ;;  %1937 = vmatprep.mubr.msk.bf16.mxu1 %vm2317_vm0, %v2316_v0  ;;  %v295_v63 = vmax.f32 %v271_v60, 0.0 }
 0x12a   :  { %v1894_v48 = vpop.f32.mrf.mxu0 }
 0x12b   :  { %v293_v54 = vmax.f32 %v263_v50, 0.0  ;;  %v274_v57 = vadd.f32 %v1894_v48, %v1776_v47 }
 0x12c   :  { %v265_v51 = vpop.f32.mrf.mxu0 }
 0x12d   :  { %v266_v52 = vadd.f32 %v1776_v47, %v265_v51  ;;  %v296_v62 = vmax.f32 %v274_v57, 0.0 }
 0x12e   :  { %v1897_v53 = vpop.f32.mrf.mxu0 }
 0x12f   :  { %v294_v55 = vmax.f32 %v266_v52, 0.0  ;;  %v491_v3 = vpack.c.bf16 %v296_v62, %v295_v63  ;;  %v287_v7 = vadd.f32 %v1897_v53, %v1776_v47 }
 0x130   :  { %v278_v56 = vpop.f32.mrf.mxu0 }
 0x131   :  { %v490_v58 = vpack.c.bf16 %v294_v55, %v293_v54  ;;  %v279_v1 = vadd.f32 %v1776_v47, %v278_v56  ;;  %v299_v9 = vmax.f32 %v287_v7, 0.0 }
 0x132   :  { %v1898_v59 = vpop.f32.mrf.mxu0 }
 0x133   :  { %635 = vmatmul.mubr.bf16.vlgmr.msra.gmra.mxu0 %v490_v58  ;;  %v297_v4 = vmax.f32 %v279_v1, 0.0  ;;  %v290_v8 = vadd.f32 %v1898_v59, %v1776_v47 }
 0x134   :  { %644 = vmatprep.mubr.bf16.mxu0 %v2318_v37  ;;  %v281_v61 = vpop.f32.mrf.mxu0 }
 0x135   :  { %v282_v2 = vadd.f32 %v1776_v47, %v281_v61  ;;  %v300_v10 = vmax.f32 %v290_v8, 0.0 }
 0x137   :  { %v298_v5 = vmax.f32 %v282_v2, 0.0  ;;  %v493_v11 = vpack.c.bf16 %v300_v10, %v299_v9 }
 0x139   :  { %v492_v6 = vpack.c.bf16 %v298_v5, %v297_v4 }
 0x13b   :  { %645 = vmatmul.mubr.bf16.gmra.mxu0 %v491_v3 }
 0x13c   :  { %654 = vmatprep.mubr.bf16.mxu0 %v2318_v37 }
 0x143   :  { %655 = vmatmul.mubr.bf16.gmra.mxu0 %v492_v6 }
 0x144   :  { %664 = vmatprep.mubr.bf16.mxu0 %v2318_v37 }
 0x14b   :  { %665 = vmatmul.mubr.bf16.gmra.mxu0 %v493_v11 }
 0x14c   :  { %1931 = vmatprep.mubr.msk.bf16.mxu0 %vm2317_vm0, %v2316_v0 }
 0x1e8   :  { %v484_v23 = vpop.f32.mrf.mxu1 }
 0x1e9   :  { %v485_v24 = vadd.f32 %v1794_v18, %v484_v23 }
 0x1ea   :  { %v1927_v26 = vpop.f32.mrf.mxu1 }
 0x1eb   :  { %v683_v27 = vrot.slane %v485_v24, %v2456_v19  ;;  %v676_v48 = vcombine.high %v485_v24, %v485_v24 }
 0x1ec   :  { %v487_v30 = vpop.f32.mrf.mxu1 }
 0x1ed   :  { %v691_v31 = vcombine.high %v683_v27, %v683_v27  ;;  %v699_v32 = vrot.slane %v683_v27, %v2456_v19  ;;  %v690_v55 = vrot.slane %v676_v48, %v2456_v19 }
 0x1ee   :  { %v1928_v34 = vpop.f32.mrf.mxu1 }
 0x1ef   :  { %v713_v36 = vrot.slane %v691_v31, %v2456_v19  ;;  %v728_v38 = vrot.slane %v699_v32, %v2458_v25  ;;  %v721_v56 = vcombine.high %v699_v32, %v699_v32  ;;  %v706_v62 = vrot.slane %v690_v55, %v2456_v19 }
 0x1f0   :  { %v692_v14 = vcombine.high %v690_v55, %v690_v55 }
 0x1f1   :  { %v732_v43 = vrot.slane %v713_v36, %v2458_v25  ;;  %v765_v46 = vmul.f32 %v2473_v39, %v728_v38  ;;  %v736_v63 = vrot.slane %v721_v56, %v2458_v25  ;;  %v723_v6 = vcombine.high %v713_v36, %v713_v36 }
 0x1f2   :  { %v744_v7 = vrot.slane %v706_v62, %v2458_v25  ;;  %v722_v15 = vcombine.high %v706_v62, %v706_v62  ;;  %v720_v26 = vrot.slane %v692_v14, %v2456_v19 }
 0x1f3   :  { %v636_v37 = vpop.f32.mrf.mxu0  ;;  %v766_v53 = vmul.f32 %v2473_v39, %v732_v43  ;;  %v773_v54 = vpack.c.bf16 %v765_v46, %v765_v46  ;;  %v767_v9 = vmul.f32 %v2473_v39, %v736_v63  ;;  %v740_v20 = vrot.slane %v723_v6, %v2458_v25 }
 0x1f4   :  { %v637_v40 = vadd.f32 %v636_v37, %v2466_v33  ;;  %v769_v18 = vmul.f32 %v2473_v39, %v744_v7  ;;  %v752_v30 = vrot.slane %v722_v15, %v2458_v25  ;;  %v748_v37 = vrot.slane %v720_v26, %v2458_v25 }
 0x1f5   :  { %v638_v41 = vpop.f32.mrf.mxu0  ;;  %v774_v61 = vpack.c.bf16 %v766_v53, %v766_v53  ;;  %v775_v17 = vpack.c.bf16 %v767_v9, %v767_v9  ;;  %v768_v29 = vmul.f32 %v2473_v39, %v740_v20 }
 0x1f6   :  { %v2477_v42 = vadd.f32 %v638_v41, %v2468_v35  ;;  %v781_v44 = vpack.c.bf16 %v637_v40, %v637_v40  ;;  %v777_v28 = vpack.c.bf16 %v769_v18, %v769_v18  ;;  %v771_v36 = vmul.f32 %v2473_v39, %v752_v30 }
 0x1f7   :  { %v640_v45 = vpop.f32.mrf.mxu0  ;;  %v776_v19 = vpack.c.bf16 %v768_v29, %v768_v29  ;;  %v724_v41 = vcombine.high %v720_v26, %v720_v26 }
 0x1f8   :  { %v641_v47 = vadd.f32 %v640_v45, %v2466_v33  ;;  %1930 = vmatpush3.bf16.xpose.msra.mxu0 %v781_v44  ;;  %v779_v43 = vpack.c.bf16 %v771_v36, %v771_v36  ;;  %v770_v44 = vmul.f32 %v2473_v39, %v748_v37 }
 0x1f9   :  { %v642_v49 = vpop.f32.mrf.mxu0  ;;  %1953 = vmatprep.subr.bf16.mxu0 %v2316_v0 }
 0x1fa   :  { %v782_v50 = vpack.c.bf16 %v641_v47, %v641_v47  ;;  %v2483_v51 = vadd.f32 %v642_v49, %v2468_v35  ;;  %v778_v46 = vpack.c.bf16 %v770_v44, %v770_v44  ;;  %v756_v47 = vrot.slane %v724_v41, %v2458_v25 }
 0x1fb   :  { %v646_v52 = vpop.f32.mrf.mxu0 }
 0x1fc   :  { %1936 = vmatpush3.bf16.xpose.msra.mxu1 %v782_v50  ;;  %v647_v58 = vadd.f32 %v646_v52, %v2466_v33  ;;  %v772_v49 = vmul.f32 %v2473_v39, %v756_v47 }
 0x1fd   :  { %v648_v57 = vpop.f32.mrf.mxu0  ;;  %1941 = vmatprep.subr.bf16.mxu1 %v2316_v0 }
 0x1fe   :  { %v2491_v59 = vadd.f32 %v648_v57, %v2468_v35  ;;  %v783_v2 = vpack.c.bf16 %v647_v58, %v647_v58  ;;  %v780_v50 = vpack.c.bf16 %v772_v49, %v772_v49 }
 0x1ff   :  { %v650_v60 = vpop.f32.mrf.mxu0  ;;  %1932 = vmatmul.mubr.bf16.vlgmr.msra.gmra.mxu0 %v773_v54 }
 0x200   :  { %1955 = vmatprep.mubr.msk.bf16.mxu0 %vm2317_vm0, %v2316_v0  ;;  %v651_v10 = vadd.f32 %v650_v60, %v2466_v33 }
 0x201   :  { %v652_v1 = vpop.f32.mrf.mxu0 }
 0x202   :  { %v2498_v3 = vadd.f32 %v652_v1, %v2468_v35  ;;  %v784_v21 = vpack.c.bf16 %v651_v10, %v651_v10 }
 0x203   :  { %v656_v4 = vpop.f32.mrf.mxu0  ;;  %1938 = vmatmul.mubr.bf16.vlgmr.msra.gmra.mxu1 %v774_v61 }
 0x204   :  { %v657_v5 = vadd.f32 %v656_v4, %v2466_v33  ;;  %1942 = vmatpush3.bf16.xpose.msra.mxu1 %v783_v2  ;;  %1943 = vmatprep.mubr.msk.bf16.mxu1 %vm2317_vm0, %v2316_v0 }
 0x205   :  { %v658_v8 = vpop.f32.mrf.mxu0  ;;  %1947 = vmatprep.subr.bf16.mxu1 %v2316_v0 }
 0x206   :  { %v785_v11 = vpack.c.bf16 %v657_v5, %v657_v5  ;;  %v2508_v12 = vadd.f32 %v658_v8, %v2468_v35 }
 0x207   :  { %v660_v13 = vpop.f32.mrf.mxu0 }
 0x208   :  { %1954 = vmatpush3.bf16.xpose.msra.mxu0 %v785_v11  ;;  %v661_v31 = vadd.f32 %v660_v13, %v2466_v33 }
 0x209   :  { %v662_v16 = vpop.f32.mrf.mxu0  ;;  %1965 = vmatprep.subr.bf16.mxu0 %v2316_v0 }
 0x20a   :  { %v2514_v22 = vadd.f32 %v662_v16, %v2468_v35  ;;  %v786_v38 = vpack.c.bf16 %v661_v31, %v661_v31 }
 0x20b   :  { %v666_v23 = vpop.f32.mrf.mxu0  ;;  %1944 = vmatmul.mubr.bf16.vlgmr.msra.gmra.mxu1 %v775_v17 }
 0x20c   :  { %v667_v24 = vadd.f32 %v666_v23, %v2466_v33  ;;  %1948 = vmatpush3.bf16.xpose.msra.mxu1 %v784_v21  ;;  %1949 = vmatprep.mubr.msk.bf16.mxu1 %vm2317_vm0, %v2316_v0 }
 0x20d   :  { %v668_v27 = vpop.f32.mrf.mxu0  ;;  %1959 = vmatprep.subr.bf16.mxu1 %v2316_v0 }
 0x20e   :  { %v787_v32 = vpack.c.bf16 %v667_v24, %v667_v24  ;;  %v2525_v34 = vadd.f32 %v668_v27, %v2468_v35 }
 0x20f   :  { %1956 = vmatmul.mubr.bf16.vlgmr.msra.gmra.mxu0 %v777_v28  ;;  %v670_v40 = vpop.f32.mrf.mxu0 }
 0x210   :  { %1966 = vmatpush3.bf16.xpose.msra.mxu0 %v787_v32  ;;  %1967 = vmatprep.mubr.msk.bf16.mxu0 %vm2317_vm0, %v2316_v0  ;;  %v671_v45 = vadd.f32 %v670_v40, %v2466_v33 }
 0x211   :  { %v2543_v33 = vpop.f32.mrf.mxu0 }
 0x212   :  { %v788_v48 = vpack.c.bf16 %v671_v45, %v671_v45 }
 0x213   :  { %1950 = vmatmul.mubr.bf16.vlgmr.msra.gmra.mxu1 %v776_v19 }
 0x214   :  { %1960 = vmatpush3.bf16.xpose.msra.mxu1 %v786_v38  ;;  %1961 = vmatprep.mubr.msk.bf16.mxu1 %vm2317_vm0, %v2316_v0 }
 0x215   :  { %1971 = vmatprep.subr.bf16.mxu1 %v2316_v0 }
 0x217   :  { %1968 = vmatmul.mubr.bf16.vlgmr.msra.gmra.mxu0 %v779_v43 }
 0x21b   :  { %1962 = vmatmul.mubr.bf16.vlgmr.msra.gmra.mxu1 %v778_v46 }
 0x21c   :  { %1972 = vmatpush3.bf16.xpose.msra.mxu1 %v788_v48  ;;  %1973 = vmatprep.mubr.msk.bf16.mxu1 %vm2317_vm0, %v2316_v0 }
 0x21d   :  { %1987 = vmatprep.subr.bf16.mxu1 %v2316_v0 }
 0x223   :  { %1974 = vmatmul.mubr.bf16.vlgmr.msra.gmra.mxu1 %v780_v50 }
 0x224   :  { %2003 = vmatprep.mubr.msk.bf16.mxu1 %vm2317_vm0, %v2316_v0 }
 0x2bf   :  { %v823_v52 = vpop.f32.mrf.mxu0 }
 0x2c0   :  { %v1109_v25 = vmul.f32 0.35355338, %v823_v52 }
 0x2c1   :  { %v1933_v53 = vpop.f32.mrf.mxu0 }
 0x2c2   :  { %v1118_v55 = vsel %vm1117_vm6, %v1109_v25, -inf }
 0x2c3   :  { %v863_v54 = vpop.f32.mrf.mxu1  ;;  %1119 = vmax.xlane.f32.xlu0 %v1118_v55  ;;  %v826_v57 = vpop.f32.mrf.mxu0 }
 0x2c4   :  { %v1110_v56 = vmul.f32 0.35355338, %v863_v54 }
 0x2c5   :  { %v1939_v58 = vpop.f32.mrf.mxu1  ;;  %v1934_v60 = vpop.f32.mrf.mxu0 }
 0x2c6   :  { %v1121_v61 = vsel %vm1117_vm6, %v1110_v56, -inf }
 0x2c7   :  { %v866_v62 = vpop.f32.mrf.mxu1  ;;  %1122 = vmax.xlane.f32.xlu0 %v1121_v61 }
 0x2c9   :  { %v1940_v63 = vpop.f32.mrf.mxu1 }
 0x2cb   :  { %v903_v1 = vpop.f32.mrf.mxu1 }
 0x2cc   :  { %v1111_v2 = vmul.f32 0.35355338, %v903_v1 }
 0x2cd   :  { %v1945_v4 = vpop.f32.mrf.mxu1 }
 0x2ce   :  { %v1124_v5 = vsel %vm1117_vm6, %v1111_v2, -inf }
 0x2cf   :  { %1125 = vmax.xlane.f32.xlu1 %v1124_v5  ;;  %v906_v6 = vpop.f32.mrf.mxu1  ;;  %v983_v7 = vpop.f32.mrf.mxu0 }
 0x2d0   :  { %v1113_v8 = vmul.f32 0.35355338, %v983_v7 }
 0x2d1   :  { %v1946_v9 = vpop.f32.mrf.mxu1  ;;  %v1957_v10 = vpop.f32.mrf.mxu0 }
 0x2d2   :  { %v1130_v11 = vsel %vm1117_vm6, %v1113_v8, -inf }
 0x2d3   :  { %v943_v13 = vpop.f32.mrf.mxu1  ;;  %1131 = vmax.xlane.f32.xlu0 %v1130_v11  ;;  %v986_v14 = vpop.f32.mrf.mxu0 }
 0x2d4   :  { %v1112_v15 = vmul.f32 0.35355338, %v943_v13 }
 0x2d5   :  { %v1951_v16 = vpop.f32.mrf.mxu1  ;;  %v1958_v17 = vpop.f32.mrf.mxu0 }
 0x2d6   :  { %v1127_v18 = vsel %vm1117_vm6, %v1112_v15, -inf }
 0x2d7   :  { %1128 = vmax.xlane.f32.xlu1 %v1127_v18  ;;  %v946_v20 = vpop.f32.mrf.mxu1  ;;  %v1063_v21 = vpop.f32.mrf.mxu0 }
 0x2d8   :  { %v1115_v23 = vmul.f32 0.35355338, %v1063_v21 }
 0x2d9   :  { %v1952_v24 = vpop.f32.mrf.mxu1  ;;  %v1969_v26 = vpop.f32.mrf.mxu0 }
 0x2da   :  { %v1136_v27 = vsel %vm1117_vm6, %v1115_v23, -inf }
 0x2db   :  { %v1023_v28 = vpop.f32.mrf.mxu1  ;;  %1137 = vmax.xlane.f32.xlu0 %v1136_v27  ;;  %v1066_v29 = vpop.f32.mrf.mxu0 }
 0x2dc   :  { %v1114_v30 = vmul.f32 0.35355338, %v1023_v28 }
 0x2dd   :  { %v1963_v31 = vpop.f32.mrf.mxu1  ;;  %v1970_v32 = vpop.f32.mrf.mxu0 }
 0x2de   :  { %v1133_v19 = vsel %vm1117_vm6, %v1114_v30, -inf }
 0x2df   :  { %1134 = vmax.xlane.f32.xlu1 %v1133_v19  ;;  %v1026_v36 = vpop.f32.mrf.mxu1 }
 0x2e1   :  { %v1964_v37 = vpop.f32.mrf.mxu1 }
 0x2e3   :  { %v1103_v38 = vpop.f32.mrf.mxu1 }
 0x2e4   :  { %v1116_v40 = vmul.f32 0.35355338, %v1103_v38 }
 0x2e5   :  { %v1975_v41 = vpop.f32.mrf.mxu1 }
 0x2e6   :  { %v1139_v43 = vsel %vm1117_vm6, %v1116_v40, -inf }
 0x2e7   :  { %1140 = vmax.xlane.f32.xlu1 %v1139_v43  ;;  %v1106_v44 = vpop.f32.mrf.mxu1 }
 0x2e9   :  { %v1976_v45 = vpop.f32.mrf.mxu1 }
 0x34c   :  { %v1120_v46 = vpop.xlane.xlu0 %1119 }
 0x34d   :  { %v1142_v47 = vsub.f32 %v1109_v25, %v1120_v46 }
 0x34f   :  { %v1150_v48 = vmul.f32 1.442695, %v1142_v47 }
 0x350   :  { %v1123_v49 = vpop.xlane.xlu0 %1122 }
 0x351   :  { %2103 = vpow2.f32 %v1150_v48  ;;  %v1143_v50 = vsub.f32 %v1110_v56, %v1123_v49  ;;  %v1466_v49 = vpack.c.bf16 %v2473_v39, %v2473_v39 }
 0x353   :  { %v1152_v52 = vmul.f32 1.442695, %v1143_v50  ;;  %2007 = vmatprep.subr.msk.bf16.mxu0 %vm1480_vm7, %v1466_v49 }
 0x355   :  { %2105 = vpow2.f32 %v1152_v52 }
 0x358   :  { %v1126_v53 = vpop.xlane.xlu1 %1125 }
 0x359   :  { %v1144_v54 = vsub.f32 %v1111_v2, %v1126_v53  ;;  %v1482_v53 = vsel %vm1480_vm7, %v1466_v49, 0 }
 0x35a   :  { %1978 = vmatpush3.bf16.msra.mxu0 %v1482_v53 }
 0x35b   :  { %v1154_v55 = vmul.f32 1.442695, %v1144_v54 }
 0x35c   :  { %v1132_v57 = vpop.xlane.xlu0 %1131 }
 0x35d   :  { %2107 = vpow2.f32 %v1154_v55  ;;  %v1146_v58 = vsub.f32 %v1113_v8, %v1132_v57 }
 0x35e   :  { %v2104_v60 = vpop.eup %2103 }
 0x35f   :  { %v1158_v61 = vmul.f32 1.442695, %v1146_v58  ;;  %v1166_v63 = vsel %vm1117_vm6, %v2104_v60, 0.0 }
 0x360   :  { %v1129_v62 = vpop.xlane.xlu1 %1128  ;;  %1167 = vadd.xlane.f32.xlu0 %v1166_v63 }
 0x361   :  { %2109 = vpow2.f32 %v1158_v61  ;;  %v1145_v1 = vsub.f32 %v1112_v15, %v1129_v62 }
 0x362   :  { %v2106_v25 = vpop.eup %2105 }
 0x363   :  { %v1156_v4 = vmul.f32 1.442695, %v1145_v1  ;;  %v1169_v56 = vsel %vm1117_vm6, %v2106_v25, 0.0 }
 0x364   :  { %v1138_v5 = vpop.xlane.xlu0 %1137  ;;  %1170 = vadd.xlane.f32.xlu1 %v1169_v56 }
 0x365   :  { %2111 = vpow2.f32 %v1156_v4  ;;  %v1148_v2 = vsub.f32 %v1115_v23, %v1138_v5 }
 0x367   :  { %v1162_v6 = vmul.f32 1.442695, %v1148_v2 }
 0x368   :  { %v1135_v7 = vpop.xlane.xlu1 %1134 }
 0x369   :  { %2113 = vpow2.f32 %v1162_v6  ;;  %v1147_v8 = vsub.f32 %v1114_v30, %v1135_v7 }
 0x36a   :  { %v2108_v9 = vpop.eup %2107 }
 0x36b   :  { %v1160_v10 = vmul.f32 1.442695, %v1147_v8  ;;  %v1172_v11 = vsel %vm1117_vm6, %v2108_v9, 0.0 }
 0x36c   :  { %1173 = vadd.xlane.f32.xlu0 %v1172_v11 }
 0x36d   :  { %2115 = vpow2.f32 %v1160_v10 }
 0x36e   :  { %v2110_v13 = vpop.eup %2109 }
 0x36f   :  { %v1178_v14 = vsel %vm1117_vm6, %v2110_v13, 0.0 }
 0x370   :  { %v1141_v15 = vpop.xlane.xlu1 %1140  ;;  %1179 = vadd.xlane.f32.xlu0 %v1178_v14 }
 0x371   :  { %v1149_v16 = vsub.f32 %v1116_v40, %v1141_v15 }
 0x372   :  { %v2112_v17 = vpop.eup %2111 }
 0x373   :  { %v1164_v18 = vmul.f32 1.442695, %v1149_v16  ;;  %v1175_v20 = vsel %vm1117_vm6, %v2112_v17, 0.0 }
 0x374   :  { %1176 = vadd.xlane.f32.xlu1 %v1175_v20  ;;  %v2096_v20 = vld [vmem:[#allocation13 + $0x30] sm:$0xff]  }
 0x375   :  { %2117 = vpow2.f32 %v1164_v18  ;;  %v2095_v18 = vld [vmem:[#allocation13 + $0x38] sm:$0xff]  }
 0x376   :  { %v2114_v21 = vpop.eup %2113  ;;  %1988 = vmatpush3.bf16.msra.mxu1 %v2095_v18 }
 0x377   :  { %v1184_v23 = vsel %vm1117_vm6, %v2114_v21, 0.0  ;;  %1989 = vmatprep.subr.bf16.mxu1 %v2316_v0 }
 0x378   :  { %1185 = vadd.xlane.f32.xlu0 %v1184_v23  ;;  %v2098_v23 = vld [vmem:[#allocation13 + $0x20] sm:$0xff]  }
 0x37a   :  { %v2116_v24 = vpop.eup %2115  ;;  %1990 = vmatpush3.bf16.msra.mxu1 %v2096_v20 }
 0x37b   :  { %v1181_v26 = vsel %vm1117_vm6, %v2116_v24, 0.0  ;;  %1991 = vmatprep.subr.bf16.mxu1 %v2316_v0 }
 0x37c   :  { %1182 = vadd.xlane.f32.xlu1 %v1181_v26  ;;  %v2100_v26 = vld [vmem:[#allocation13 + $0x10] sm:$0xff]  }
 0x382   :  { %v2118_v27 = vpop.eup %2117 }
 0x383   :  { %v1187_v28 = vsel %vm1117_vm6, %v2118_v27, 0.0 }
 0x384   :  { %1188 = vadd.xlane.f32.xlu1 %v1187_v28  ;;  %v2102_v28 = vld [vmem:[#allocation13] sm:$0xff]  }
 0x3e9   :  { %v1168_v29 = vpop.xlane.xlu0 %1167 }
 0x3ea   :  { %2119 = vrcp.f32 %v1168_v29 }
 0x3ed   :  { %v1171_v30 = vpop.xlane.xlu1 %1170 }
 0x3ee   :  { %2121 = vrcp.f32 %v1171_v30 }
 0x3f5   :  { %v1174_v31 = vpop.xlane.xlu0 %1173 }
 0x3f6   :  { %2123 = vrcp.f32 %v1174_v31 }
 0x3f7   :  { %v2120_v32 = vpop.eup %2119 }
 0x3f8   :  { %v1198_v37 = vmul.f32 %v2120_v32, %v2104_v60 }
 0x3f9   :  { %v1180_v41 = vpop.xlane.xlu0 %1179 }
 0x3fb   :  { %v2122_v19 = vpop.eup %2121 }
 0x3fc   :  { %v1199_v38 = vmul.f32 %v2122_v19, %v2106_v25 }
 0x3fd   :  { %v1177_v36 = vpop.xlane.xlu1 %1176 }
 0x3fe   :  { %2125 = vrcp.f32 %v1177_v36  ;;  %v2024_v40 = vpack.i.bf16 %v1199_v38, %v1198_v37 }
 0x3ff   :  { %2127 = vrcp.f32 %v1180_v41 }
 0x400   :  { %2025 = vxpose.xlu0.b32.start.end [1/1] (short) (narrow) %v2024_v40, 8 }
 0x401   :  { %v1186_v45 = vpop.xlane.xlu0 %1185 }
 0x403   :  { %v2124_v44 = vpop.eup %2123 }
 0x404   :  { %v1200_v47 = vmul.f32 %v2124_v44, %v2108_v9 }
 0x405   :  { %v1183_v43 = vpop.xlane.xlu1 %1182 }
 0x406   :  { %2129 = vrcp.f32 %v1183_v43 }
 0x407   :  { %2131 = vrcp.f32 %v1186_v45 }
 0x40b   :  { %v2126_v46 = vpop.eup %2125 }
 0x40c   :  { %v1201_v48 = vmul.f32 %v2126_v46, %v2112_v17  ;;  %v2128_v54 = vpop.eup %2127 }
 0x40d   :  { %v1189_v50 = vpop.xlane.xlu1 %1188  ;;  %v1202_v57 = vmul.f32 %v2128_v54, %v2110_v13 }
 0x40e   :  { %2133 = vrcp.f32 %v1189_v50  ;;  %v2031_v52 = vpack.i.bf16 %v1201_v48, %v1200_v47 }
 0x410   :  { %2032 = vxpose.xlu1.b32.start.end [1/1] (short) (narrow) %v2031_v52, 8 }
 0x413   :  { %v2130_v55 = vpop.eup %2129 }
 0x414   :  { %v1203_v58 = vmul.f32 %v2130_v55, %v2116_v24  ;;  %v2132_v61 = vpop.eup %2131  ;;  %v2099_v24 = vld [vmem:[#allocation13 + $0x18] sm:$0xff]  }
 0x415   :  { %v1204_v63 = vmul.f32 %v2132_v61, %v2114_v21  ;;  %v2097_v21 = vld [vmem:[#allocation13 + $0x28] sm:$0xff]  }
 0x416   :  { %v2038_v60 = vpack.i.bf16 %v1203_v58, %v1202_v57  ;;  %1992 = vmatpush3.bf16.msra.mxu1 %v2097_v21 }
 0x417   :  { %1993 = vmatprep.subr.bf16.mxu1 %v2316_v0 }
 0x418   :  { %2039 = vxpose.xlu0.b32.start.end [1/1] (short) (narrow) %v2038_v60, 8 }
 0x41a   :  { %1994 = vmatpush3.bf16.msra.mxu1 %v2098_v23 }
 0x41b   :  { %v2134_v62 = vpop.eup %2133  ;;  %1995 = vmatprep.subr.bf16.mxu1 %v2316_v0 }
 0x41c   :  { %v1205_v1 = vmul.f32 %v2134_v62, %v2118_v27  ;;  %v2101_v27 = vld [vmem:[#allocation13 + $0x8] sm:$0xff]  }
 0x41e   :  { %v2045_v25 = vpack.i.bf16 %v1205_v1, %v1204_v63  ;;  %1996 = vmatpush3.bf16.msra.mxu1 %v2099_v24 }
 0x41f   :  { %1997 = vmatprep.subr.bf16.mxu1 %v2316_v0 }
 0x420   :  { %2046 = vxpose.xlu0.b32.start.end [1/1] (short) (narrow) %v2045_v25, 8 }
 0x422   :  { %1998 = vmatpush3.bf16.msra.mxu1 %v2100_v26 }
 0x423   :  { %1999 = vmatprep.subr.bf16.mxu1 %v2316_v0 }
 0x426   :  { %2000 = vmatpush3.bf16.msra.mxu1 %v2101_v27 }
 0x427   :  { %2001 = vmatprep.subr.bf16.mxu1 %v2316_v0 }
 0x42a   :  { %2002 = vmatpush3.bf16.msra.mxu1 %v2102_v28 }
 0x47c   :  { %v2026_v39 = vpop.trf.xlu0 }
 0x47d   :  { %v2030_v4 = vunpack.i.h.bf16 %v2026_v39  ;;  %v2027_v56 = vunpack.i.l.bf16 %v2026_v39  ;;  %v673_v39 = vadd.f32 %v2543_v33, %v2468_v35 }
 0x47f   :  { %v1462_v5 = vpack.c.bf16 %v2030_v4, %v2027_v56 }
 0x481   :  { %1979 = vmatprep.mubr.msk.bf16.mxu0 %vm1467_vm8, %v1462_v5 }
 0x48c   :  { %v2033_v2 = vpop.trf.xlu1 }
 0x48d   :  { %v2037_v6 = vunpack.i.h.bf16 %v2033_v2  ;;  %v2034_v7 = vunpack.i.l.bf16 %v2033_v2 }
 0x48f   :  { %v1463_v8 = vpack.c.bf16 %v2037_v6, %v2034_v7 }
 0x491   :  { %1980 = vmatmul.mubr.msk.bf16.vlgmr.msra.gmra.mxu0 %vm1467_vm8, %v1463_v8 }
 0x494   :  { %v2040_v9 = vpop.trf.xlu0 }
 0x495   :  { %v2044_v10 = vunpack.i.h.bf16 %v2040_v9  ;;  %v2041_v11 = vunpack.i.l.bf16 %v2040_v9 }
 0x497   :  { %v1464_v13 = vpack.c.bf16 %v2044_v10, %v2041_v11 }
 0x499   :  { %1983 = vmatprep.mubr.msk.bf16.mxu0 %vm1467_vm8, %v1464_v13 }
 0x49c   :  { %v2047_v14 = vpop.trf.xlu0 }
 0x49d   :  { %v2051_v15 = vunpack.i.h.bf16 %v2047_v14  ;;  %v2048_v16 = vunpack.i.l.bf16 %v2047_v14 }
 0x49f   :  { %v1465_v17 = vpack.c.bf16 %v2051_v15, %v2048_v16 }
 0x4a1   :  { %1984 = vmatmul.mubr.msk.bf16.gmra.mxu0 %vm1467_vm8, %v1465_v17 }
 0x551   :  { %v1981_v29 = vpop.f32.mrf.mxu0 }
 0x552   :  { %v1551_v30 = vmul.f32 %v1981_v29, %v2491_v59 }
 0x553   :  { %v1518_v31 = vpop.f32.mrf.mxu0 }
 0x554   :  { %v1569_v32 = vrot.slane %v1551_v30, 4  ;;  %v1549_v19 = vmul.f32 %v1518_v31, %v2477_v42 }
 0x555   :  { %v1982_v36 = vpop.f32.mrf.mxu0 }
 0x556   :  { %v1570_v37 = vadd.f32 %v1569_v32, %v1551_v30  ;;  %v1557_v38 = vrot.slane %v1549_v19, 4  ;;  %v1552_v40 = vmul.f32 %v1982_v36, %v2498_v3 }
 0x557   :  { %v1521_v41 = vpop.f32.mrf.mxu0 }
 0x558   :  { %v1571_v43 = vrot.slane %v1570_v37, 2  ;;  %v1558_v44 = vadd.f32 %v1557_v38, %v1549_v19  ;;  %v1575_v45 = vrot.slane %v1552_v40, 4  ;;  %v1550_v0 = vmul.f32 %v1521_v41, %v2483_v51 }
 0x55a   :  { %v1572_v46 = vadd.f32 %v1571_v43, %v1570_v37  ;;  %v1559_v47 = vrot.slane %v1558_v44, 2  ;;  %v1576_v48 = vadd.f32 %v1575_v45, %v1552_v40  ;;  %v1563_v49 = vrot.slane %v1550_v0, 4 }
 0x55c   :  { %v1560_v59 = vadd.f32 %v1559_v47, %v1558_v44  ;;  %v1577_v50 = vrot.slane %v1576_v48, 2  ;;  %v1564_v52 = vadd.f32 %v1563_v49, %v1550_v0  ;;  %v1573_v53 = vrot.slane %v1572_v46, 1 }
 0x55e   :  { %v1561_v42 = vrot.slane %v1560_v59, 1  ;;  %v1578_v54 = vadd.f32 %v1577_v50, %v1576_v48  ;;  %v1565_v55 = vrot.slane %v1564_v52, 2  ;;  %v1574_v60 = vadd.f32 %v1573_v53, %v1572_v46 }
 0x560   :  { %v1562_v57 = vadd.f32 %v1561_v42, %v1560_v59  ;;  %v1579_v58 = vrot.slane %v1578_v54, 1  ;;  %v1566_v3 = vadd.f32 %v1565_v55, %v1564_v52  ;;  %v1607_v5 = vpack.c.bf16 %v1574_v60, %v1574_v60 }
 0x561   :  { %v1985_v61 = vpop.f32.mrf.mxu0 }
 0x562   :  { %v1580_v62 = vadd.f32 %v1579_v58, %v1578_v54  ;;  %v1567_v63 = vrot.slane %v1566_v3, 1  ;;  %v1605_v1 = vpack.c.bf16 %v1562_v57, %v1562_v57  ;;  %v1555_v51 = vmul.f32 %v1985_v61, %v2525_v34  ;;  %v1823_v57 = vld [vmem:[%s2600_s11] ss:$0 sm:$0xff] }
 0x563   :  { %v1534_v25 = vpop.f32.mrf.mxu0  ;;  %v1646_v33 = vunpack.c.l.b16 %v1607_v5 }
 0x564   :  { %v1568_v4 = vadd.f32 %v1567_v63, %v1566_v3  ;;  %v1553_v56 = vmul.f32 %v1534_v25, %v2508_v12  ;;  %v1608_v2 = vpack.c.bf16 %v1580_v62, %v1580_v62  ;;  %v1593_v6 = vrot.slane %v1555_v51, 4 }
 0x565   :  { %v1986_v7 = vpop.f32.mrf.mxu0  ;;  %v1644_v11 = vunpack.c.l.b16 %v1605_v1 }
 0x566   :  { %v1606_v8 = vpack.c.bf16 %v1568_v4, %v1568_v4  ;;  %v1581_v9 = vrot.slane %v1553_v56, 4  ;;  %v1556_v10 = vmul.f32 %v1986_v7, %v673_v39  ;;  %v1594_v13 = vadd.f32 %v1593_v6, %v1555_v51 }
 0x567   :  { %v1537_v14 = vpop.f32.mrf.mxu0  ;;  %v1647_v17 = vunpack.c.l.b16 %v1608_v2 }
 0x568   :  { %v1645_v34 = vunpack.c.l.b16 %v1606_v8  ;;  %v1582_v15 = vadd.f32 %v1581_v9, %v1553_v56  ;;  %v1599_v16 = vrot.slane %v1556_v10, 4  ;;  %v1554_v35 = vmul.f32 %v1537_v14, %v2514_v22 }
 0x569   :  { %v1595_v12 = vrot.slane %v1594_v13, 2 }
 0x56a   :  { %v1653_v18 = vsel %vm1652_vm9, %v1645_v34, %v1644_v11  ;;  %v1583_v20 = vrot.slane %v1582_v15, 2  ;;  %v1600_v21 = vadd.f32 %v1599_v16, %v1556_v10  ;;  %v1587_v23 = vrot.slane %v1554_v35, 4 }
 0x56b   :  { %v1655_v24 = vsel %vm1654_vm10, %v1646_v33, %v1653_v18  ;;  %v1596_v26 = vadd.f32 %v1595_v12, %v1594_v13 }
 0x56c   :  { %v1584_v27 = vadd.f32 %v1583_v20, %v1582_v15  ;;  %v1657_v28 = vsel %vm1656_vm11, %v1647_v17, %v1655_v24  ;;  %v1601_v29 = vrot.slane %v1600_v21, 2  ;;  %v1588_v30 = vadd.f32 %v1587_v23, %v1554_v35 }
 0x56d   :  { %v1597_v31 = vrot.slane %v1596_v26, 1 }
 0x56e   :  { %v1585_v32 = vrot.slane %v1584_v27, 1  ;;  %v1602_v19 = vadd.f32 %v1601_v29, %v1600_v21  ;;  %v1589_v36 = vrot.slane %v1588_v30, 2 }
 0x56f   :  { %v1598_v40 = vadd.f32 %v1597_v31, %v1596_v26 }
 0x570   :  { %v1586_v37 = vadd.f32 %v1585_v32, %v1584_v27  ;;  %v1603_v22 = vrot.slane %v1602_v19, 1  ;;  %v1590_v38 = vadd.f32 %v1589_v36, %v1588_v30 }
 0x571   :  { %v1611_v46 = vpack.c.bf16 %v1598_v40, %v1598_v40 }
 0x572   :  { %v1609_v41 = vpack.c.bf16 %v1586_v37, %v1586_v37  ;;  %v1604_v43 = vadd.f32 %v1603_v22, %v1602_v19  ;;  %v1591_v44 = vrot.slane %v1590_v38, 1 }
 0x573   :  { %v1650_v50 = vunpack.c.l.b16 %v1611_v46 }
 0x574   :  { %v1648_v45 = vunpack.c.l.b16 %v1609_v41  ;;  %v1592_v0 = vadd.f32 %v1591_v44, %v1590_v38  ;;  %v1612_v48 = vpack.c.bf16 %v1604_v43, %v1604_v43 }
 0x576   :  { %v1659_v47 = vsel %vm1658_vm12, %v1648_v45, %v1657_v28  ;;  %v1610_v49 = vpack.c.bf16 %v1592_v0, %v1592_v0  ;;  %v1651_v52 = vunpack.c.l.b16 %v1612_v48 }
 0x578   :  { %v1649_v59 = vunpack.c.l.b16 %v1610_v49 }
 0x57a   :  { %v1661_v53 = vsel %vm1660_vm13, %v1649_v59, %v1659_v47 }
 0x57b   :  { %v1663_v42 = vsel %vm1662_vm14, %v1650_v50, %v1661_v53 }
 0x57c   :  { %v1665_v54 = vsel %vm1664_vm15, %v1651_v52, %v1663_v42 }
 0x57d   :  { %v1666_v55 = vpack.c.b16 %v1665_v54, %v1665_v54 }
 0x57f   :  { %2004 = vmatmul.mubr.bf16.vlgmr.msra.gmra.mxu1 %v1666_v55 }
 0x63f   :  { %v1750_v58 = vpop.f32.mrf.mxu1 }
 0x640   :  { %v1751_v3 = vadd.f32 %v1823_v57, %v1750_v58 }
 0x641   :  { %v2005_v60 = vpop.f32.mrf.mxu1 }
 0x642   :  { %1756 = vst [vmem:[#allocation14] sm:$0xff] %v1751_v3 }
 0x643   :  { %v1753_v61 = vpop.f32.mrf.mxu1 }
 0x644   :  { %2286 = shalt.err (!%p2283_p11)
}
 0x645   :  { %1766 = dma.vmem_to_hbm [thread:$0]  %s1764_s23, 128, %s2601_s12, [#allocation4]   ;;  %v2006_v62 = vpop.f32.mrf.mxu1 }
 0x646   :  { %2303 = dma.done.wait [#allocation4], 128  }
 0x647   :  { %2304 = vsyncadd [#allocation4], 4294967168 }
 0x648   :  { %1770 = vsyncpa [#allocation3], 1 }
 0x649   :  { %1771 = vsyncpa [#allocation6], 1 }
 0x64a   :  { %1772 = vsyncpa [#allocation9], 1 }
 0x64b   :  { %1773 = vsyncpa [#allocation12], 1 }
 0x64c   :  { %1774 = vsyncpa [#allocation4], 1 }

</bundles_post_ra>
